<compile_context>
chip_gen: v7x
topology: tpu7x:2x2x1
jax: 0.10.0
libtpu: 0.0.40
codegen_flags: <defaults>
</compile_context>

<pallas_src>
import math

import jax
import jax.numpy as jnp
import numpy as np
from jax import lax
from jax.experimental import pallas as pl
from jax.experimental.pallas import tpu as pltpu


# --------------------------------------------------------------------------------------
# Kernel
# --------------------------------------------------------------------------------------
def _cross_attn_kernel(x_ref, w_ref, b_ref, out_ref):
    """out = x @ W_fused^T + b_fused for one row tile.

    W_fused = Wo @ Wv and b_fused = Wo @ bv + bo are folded in the wrapper, so the whole
    eval-mode forward is a single GEMM + bias.  The activation is cast to the weights'
    compute dtype *inside* the kernel (no wrapper-side cast pass over HBM).
    """
    x = x_ref[...].astype(w_ref.dtype)
    # Contract on axis 1 of the (un-transposed) fused weight == x @ W^T (no transpose copy).
    dn = (((1,), (1,)), ((), ()))
    out = lax.dot_general(x, w_ref[...], dn, preferred_element_type=jnp.float32)
    # Bias add stays in f32 (portable to v5e, whose VPU has no bf16 path).
    out_ref[...] = (out + b_ref[...]).astype(out_ref.dtype)


# --------------------------------------------------------------------------------------
# Wrapper helpers
# --------------------------------------------------------------------------------------
def _is_multi_tensorcore_chip():
    """True on chips with >1 TensorCore per chip (v7x); used for grid-splitting only."""
    try:
        kind = jax.devices()[0].device_kind.lower()
        return "v7" in kind
    except Exception:
        return False


def _vmem_capacity_bytes():
    try:
        return int(pltpu.get_tpu_info().vmem_capacity_bytes)
    except Exception:
        return 64 * 1024 * 1024  # conservative: v7x per-TC VMEM


def _pick_tile_n(n, dtypes, *, prefer_two_steps=False, max_tile=1024):
    """Row-tile size.

    Big tiles (up to 1024 rows) keep per-step DMAs large enough to approach the HBM
    roofline; the tile is kept a multiple of the narrowest dtype's sublane packing
    (8 for 4-byte, 16 for 2-byte, 32 for 1-byte).  On multi-TC chips the work is split
    into >=2 grid steps when possible so the "parallel" axis can shard across cores.
    """
    min_itemsize = min(jnp.dtype(d).itemsize for d in dtypes)
    align = {1: 32, 2: 16, 4: 8}.get(min_itemsize, 8)
    if n <= align:
        return n  # single block == full array (shape equals array dims, always legal)
    tile = min(n, max_tile)
    if prefer_two_steps and n <= max_tile and n >= 2 * align:
        tile = pl.cdiv(n, 2)
    tile = max(align, (tile // align) * align)
    return min(tile, max_tile)


def _const_block_spec(shape, single_buffer):
    """BlockSpec for an input whose block index never changes (weights / bias)."""
    index_map = lambda i: (0,) * len(shape)
    if single_buffer:
        try:
            # Double-buffering a constant block only wastes VMEM; request a single buffer.
            return pl.BlockSpec(shape, index_map, pipeline_mode=pl.Buffered(1))
        except Exception:
            pass
    return pl.BlockSpec(shape, index_map)


# --------------------------------------------------------------------------------------
# Public entry point
# --------------------------------------------------------------------------------------
def cross_attention_pallas(text_features, image_features, params, *,
                           num_heads=4, tile_n=None,
                           compute_dtype=jnp.bfloat16, out_dtype=None):
    """Forward pass of CrossAttention (eval mode).

    text_features is accepted for API parity with the PyTorch module, but with a single
    key/value token the attention weights are exactly 1, so the output does not depend
    on it (nor on Wq/Wk/bq/bk) -- that dead compute is deliberately not emitted.
    """
    del num_heads  # per-head split is a no-op when the softmax weight is exactly 1
    N, E = image_features.shape
    assert text_features.shape == (N, E)
    if out_dtype is None:
        out_dtype = image_features.dtype

    wv, wo = params["wv"], params["wo"]
    bv, bo = params["bv"], params["bo"]

    # Fold the two projections / biases in f32, cast the fused weight once:
    #   (x @ Wv^T + bv) @ Wo^T + bo == x @ (Wo @ Wv)^T + (Wo @ bv + bo)
    wo32 = wo.astype(jnp.float32)
    w_fused = (wo32 @ wv.astype(jnp.float32)).astype(compute_dtype)          # (E, E)
    b_fused = (wo32 @ bv.astype(jnp.float32)
               + bo.astype(jnp.float32)).reshape(1, E)                       # (1, E) f32

    x = image_features  # NO wrapper-side cast: the cast happens inside the kernel.

    if tile_n is None:
        tile_n = _pick_tile_n(
            N, (x.dtype, compute_dtype, out_dtype),
            prefer_two_steps=_is_multi_tensorcore_chip())
    grid = (pl.cdiv(N, tile_n),)

    # Single-buffer the resident weight/bias only when they are actually big (production
    # E); at E<=512 the saving is moot and the plain spec is used.
    single_buffer_weights = E >= 1024

    x_spec = pl.BlockSpec((tile_n, E), lambda i: (i, 0))
    out_spec = pl.BlockSpec((tile_n, E), lambda i: (i, 0))
    w_spec = _const_block_spec((E, E), single_buffer_weights)
    b_spec = _const_block_spec((1, E), single_buffer_weights)

    # Rough resident-VMEM estimate; raise the scoped limit only when actually required,
    # and never above ~80% of the chip's physical VMEM (v7x has 64 MiB per TC).
    in_sz = jnp.dtype(x.dtype).itemsize
    w_sz = jnp.dtype(compute_dtype).itemsize
    out_sz = jnp.dtype(out_dtype).itemsize
    w_bufs = 1 if single_buffer_weights else 2
    vmem_needed = (2 * tile_n * E * in_sz          # input row tile (double buffered)
                   + 2 * tile_n * E * out_sz       # output row tile (double buffered)
                   + w_bufs * E * E * w_sz         # fused weight
                   + w_bufs * E * 4)               # fused bias (f32)
    cp_kwargs = dict(dimension_semantics=("parallel",))
    if vmem_needed > 16 * 1024 * 1024:
        cap = int(0.8 * _vmem_capacity_bytes())
        cp_kwargs["vmem_limit_bytes"] = min(int(vmem_needed * 1.25), cap)

    return pl.pallas_call(
        _cross_attn_kernel,
        out_shape=jax.ShapeDtypeStruct((N, E), out_dtype),
        grid_spec=pltpu.PrefetchScalarGridSpec(
            num_scalar_prefetch=0,
            grid=grid,
            in_specs=[x_spec, w_spec, b_spec],
            out_specs=out_spec,
        ),
        compiler_params=pltpu.CompilerParams(**cp_kwargs),
    )(x, w_fused, b_fused)


# --------------------------------------------------------------------------------------
# Pure-JAX reference (full MHA math, eval mode) and synthetic params
# --------------------------------------------------------------------------------------
def cross_attention_reference(text, image, params, *, num_heads):
    """Pure-JAX replica of the PyTorch forward in eval mode (full MHA math kept)."""
    N, E = text.shape
    head_dim = E // num_heads
    q = text @ params["wq"].T + params["bq"]
    k = image @ params["wk"].T + params["bk"]
    v = image @ params["wv"].T + params["bv"]
    qh = q.reshape(N, num_heads, head_dim)
    kh = k.reshape(N, num_heads, head_dim)
    vh = v.reshape(N, num_heads, head_dim)
    scores = jnp.sum(qh * kh, axis=-1) / math.sqrt(head_dim)        # key seq len = 1
    weights = jax.nn.softmax(scores[..., None], axis=-1)[..., 0]    # == 1 exactly
    attn = (weights[..., None] * vh).reshape(N, E)
    return attn @ params["wo"].T + params["bo"]


def init_params(key, hidden_dim):
    """Deterministic synthetic parameters matching nn.MultiheadAttention shapes."""
    ks = jax.random.split(key, 8)
    s = 0.05
    return {
        "wq": jax.random.normal(ks[0], (hidden_dim, hidden_dim), jnp.float32) * s,
        "wk": jax.random.normal(ks[1], (hidden_dim, hidden_dim), jnp.float32) * s,
        "wv": jax.random.normal(ks[2], (hidden_dim, hidden_dim), jnp.float32) * s,
        "bq": jax.random.normal(ks[3], (hidden_dim,), jnp.float32) * s,
        "bk": jax.random.normal(ks[4], (hidden_dim,), jnp.float32) * s,
        "bv": jax.random.normal(ks[5], (hidden_dim,), jnp.float32) * s,
        "wo": jax.random.normal(ks[6], (hidden_dim, hidden_dim), jnp.float32) * s,
        "bo": jax.random.normal(ks[7], (hidden_dim,), jnp.float32) * s,
    }


if __name__ == "__main__":
    hidden_dim = 256      # module default
    num_heads = 4

    key = jax.random.PRNGKey(0)
    k_t1, k_i1, k_par, k_t2, k_i2 = jax.random.split(key, 5)
    params = init_params(k_par, hidden_dim)

    # --- small correctness check: f32 compute, f32 output (tight tolerance) ---
    batch = 16
    text_small = jax.random.normal(k_t1, (batch, hidden_dim), jnp.float32)
    img_small = jax.random.normal(k_i1, (batch, hidden_dim), jnp.float32)
    out_small = jax.block_until_ready(
        cross_attention_pallas(text_small, img_small, params, num_heads=num_heads,
                               compute_dtype=jnp.float32, out_dtype=jnp.float32))
    ref_small = cross_attention_reference(text_small, img_small, params,
                                          num_heads=num_heads)
    np.testing.assert_allclose(np.asarray(out_small), np.asarray(ref_small),
                               rtol=1e-4, atol=1e-4)

    # --- larger batch exercising big row tiles + bf16 compute and bf16 output ---
    batch_big = 512
    text_big = jax.random.normal(k_t2, (batch_big, hidden_dim), jnp.float32)
    img_big = jax.random.normal(k_i2, (batch_big, hidden_dim), jnp.float32)
    out_big = jax.block_until_ready(
        cross_attention_pallas(text_big, img_big, params, num_heads=num_heads,
                               compute_dtype=jnp.bfloat16, out_dtype=jnp.bfloat16))
    ref_big = cross_attention_reference(text_big, img_big, params, num_heads=num_heads)
    np.testing.assert_allclose(np.asarray(out_big, dtype=np.float32),
                               np.asarray(ref_big), rtol=5e-2, atol=5e-2)

    print("KERNEL_OK")
</pallas_src>

<mosaic_0001>
module attributes {stable_mosaic.version = 11 : i64} {
  func.func @_cross_attn_kernel(%arg0: i32, %arg1: memref<16x256xf32, #tpu.memory_space<vmem>>, %arg2: memref<256x256xf32, #tpu.memory_space<vmem>>, %arg3: memref<1x256xf32, #tpu.memory_space<vmem>>, %arg4: memref<16x256xf32, #tpu.memory_space<vmem>>) attributes {dimension_semantics = [#tpu.dimension_semantics<parallel>], iteration_bounds = array<i64: 1>, scalar_prefetch = 0 : i64, scratch_operands = 0 : i64, tpu.core_type = #tpu.core_type<tc>, window_params = [{transform_indices = @transform_0, window_bounds = array<i64: 16, 256>}, {pipeline_mode = #tpu.pipeline_mode<synchronous>, transform_indices = @transform_1, window_bounds = array<i64: 256, 256>}, {pipeline_mode = #tpu.pipeline_mode<synchronous>, transform_indices = @transform_2, window_bounds = array<i64: 1, 256>}, {transform_indices = @transform_3, window_bounds = array<i64: 16, 256>}]} {
    %c0 = arith.constant 0 : index
    %c0_0 = arith.constant 0 : index
    %0 = vector.load %arg1[%c0, %c0_0] : memref<16x256xf32, #tpu.memory_space<vmem>>, vector<16x256xf32>
    %c0_1 = arith.constant 0 : index
    %c0_2 = arith.constant 0 : index
    %1 = vector.load %arg2[%c0_1, %c0_2] : memref<256x256xf32, #tpu.memory_space<vmem>>, vector<256x256xf32>
    %cst = arith.constant dense<0.000000e+00> : vector<16x256xf32>
    %2 = tpu.matmul %0, %1, %cst {dimension_numbers = #tpu.dot_dimension_numbers<[1], [1], [0], [0], [0, 0, 1, 0], [], []>} : vector<16x256xf32>, vector<256x256xf32>, vector<16x256xf32> -> vector<16x256xf32>
    %c0_3 = arith.constant 0 : index
    %c0_4 = arith.constant 0 : index
    %3 = vector.load %arg3[%c0_3, %c0_4] : memref<1x256xf32, #tpu.memory_space<vmem>>, vector<1x256xf32>
    %4 = vector.broadcast %3 : vector<1x256xf32> to vector<16x256xf32>
    %5 = arith.addf %2, %4 : vector<16x256xf32>
    %c0_5 = arith.constant 0 : index
    %c0_6 = arith.constant 0 : index
    %6 = vector.load %arg4[%c0_5, %c0_6] : memref<16x256xf32, #tpu.memory_space<vmem>>, vector<16x256xf32>
    tpu.vector_store %arg4[%c0_5, %c0_6], %5 {strides = array<i32>} : memref<16x256xf32, #tpu.memory_space<vmem>>, vector<16x256xf32>,
    return
  }
  func.func @transform_0(%arg0: i32) -> (i32, i32) {
    %c0_i32 = arith.constant 0 : i32
    %c0_i32_0 = arith.constant 0 : i32
    return %arg0, %c0_i32 : i32, i32
  }
  func.func @transform_1(%arg0: i32) -> (i32, i32) {
    %c0_i32 = arith.constant 0 : i32
    %c0_i32_0 = arith.constant 0 : i32
    %c0_i32_1 = arith.constant 0 : i32
    return %c0_i32, %c0_i32_0 : i32, i32
  }
  func.func @transform_2(%arg0: i32) -> (i32, i32) {
    %c0_i32 = arith.constant 0 : i32
    %c0_i32_0 = arith.constant 0 : i32
    %c0_i32_1 = arith.constant 0 : i32
    return %c0_i32, %c0_i32_0 : i32, i32
  }
  func.func @transform_3(%arg0: i32) -> (i32, i32) {
    %c0_i32 = arith.constant 0 : i32
    %c0_i32_0 = arith.constant 0 : i32
    return %arg0, %c0_i32 : i32, i32
  }
}

</mosaic_0001>

<bundles_post_ra>
// kernel: tpu_custom_call.1
= control target key start
LH: loop header
LB: loop body
LE: loop exit
PB: predicated region body
PF: predicated region fallthrough
CT: control target
= control target key end

     0   :  { %8 = vsyncpa [#allocation3], 0  ;;  %s468_s0 = inlined_call_operand.hbm [shape: f32[16,256], index: 0, kind: input, shape index: {}]   ;;  %s469_s1 = inlined_call_operand.hbm [shape: f32[256,256], index: 1, kind: input, shape index: {}]   ;;  %s470_s2 = inlined_call_operand.vmem [shape: f32[1,256], index: 2, kind: input, shape index: {}]   ;;  %s471_s3 = inlined_call_operand.hbm [shape: f32[16,256], index: 3, kind: output, shape index: {}]  }
   0x1   :  { %9 = vsyncpa [#allocation6], 0 }
   0x2   :  { %10 = vsyncpa [#allocation4], 0  ;;  %s395_s12 = smov [#allocation2]   ;;  %s323_s16 = scalar_lea.hbm %s468_s0, 512 }
   0x3   :  { %s16_s13 = sshll.u32 %s395_s12, 4  ;;  %p324_p0 = scmp.ne.s32.totalorder %s468_s0, %s323_s16  ;;  %s17_s13 = int_to_ptr.vmem [resolvable:$true] %s16_s13 }
   0x4   :  { %p327_p1 = scmp.lt.u32.totalorder %s323_s16, %s468_s0 }
   0x6   :  { %p329_p2 = pnand %p327_p1, %p324_p0 }
   0x8   :  { %332 = shalt.err (!%p329_p2)
}
   0x9   :  { %s333_s21 = scalar_lea.vmem %s17_s13, 512  ;;  %p338_p4 = scmp.lt.s32.totalorder %s17_s13, %s17_s13 }
   0xa   :  { %p334_p3 = scmp.ne.s32.totalorder %s17_s13, %s333_s21  ;;  %p339_p5 = scmp.lt.s32.totalorder %s333_s21, %s333_s21 }
   0xc   :  { %p340_p6 = por %p339_p5, %p338_p4 }
   0xe   :  { %p341_p7 = pnand %p340_p6, %p334_p3 }
  0x10   :  { %344 = shalt.err (!%p341_p7)
}
  0x11   :  { %s396_s22 = smov 256   ;;  %s397_s23 = smov 16  }
  0x12   :  { %22 = dma.hbm_to_vmem [thread:$0]  %s468_s0, 512, %s17_s13, [#allocation3], %s396_s22, %s396_s22, %s397_s23  }
  0x13   :  { %s398_s26 = smov [#allocation5]   ;;  %s345_s30 = scalar_lea.hbm %s469_s1, 8192 }
  0x14   :  { %s28_s27 = sshll.u32 %s398_s26, 4  ;;  %p346_p8 = scmp.ne.s32.totalorder %s469_s1, %s345_s30  ;;  %s29_s27 = int_to_ptr.vmem [resolvable:$true] %s28_s27 }
  0x15   :  { %p349_p9 = scmp.lt.u32.totalorder %s345_s30, %s469_s1 }
  0x17   :  { %p351_p10 = pnand %p349_p9, %p346_p8 }
  0x19   :  { %354 = shalt.err (!%p351_p10)
}
  0x1a   :  { %s355_s8 = scalar_lea.vmem %s29_s27, 8192  ;;  %p360_p12 = scmp.lt.s32.totalorder %s29_s27, %s29_s27 }
  0x1b   :  { %p356_p11 = scmp.ne.s32.totalorder %s29_s27, %s355_s8  ;;  %p361_p13 = scmp.lt.s32.totalorder %s355_s8, %s355_s8 }
  0x1d   :  { %p362_p0 = por %p361_p13, %p360_p12 }
  0x1f   :  { %p363_p1 = pnand %p362_p0, %p356_p11 }
  0x21   :  { %366 = shalt.err (!%p363_p1)
}
  0x22   :  { %34 = dma.hbm_to_vmem [thread:$0]  %s469_s1, 8192, %s29_s27, [#allocation6], %s396_s22, %s396_s22, %s397_s23  }
  0x23   :  { %389 = dma.done.wait [#allocation3], 512  }
  0x24   :  { %390 = vsyncadd [#allocation3], 4294966784 }
  0x25   :  { %391 = dma.done.wait [#allocation6], 8192  }
  0x26   :  { %392 = vsyncadd [#allocation6], 4294959104  ;;  %v48_v0 = vld [vmem:[#allocation5 + $0x8] sm:$0xff]  ;;  %v50_v1 = vld [vmem:[#allocation5 + $0x18] sm:$0xff]  ;;  %s399_s11 = smov [#allocation7]  }
  0x27   :  { %v47_v2 = vld [vmem:[#allocation5] sm:$0xff]  ;;  %v222_v3 = vpack.c.bf16 %v50_v1, %v48_v0  ;;  %v49_v4 = vld [vmem:[#allocation5 + $0x10] sm:$0xff]  ;;  %v52_v5 = vld [vmem:[#allocation5 + $0x28] sm:$0xff]  ;;  %s209_s12 = sshll.u32 %s399_s11, 4  ;;  %s210_s12 = int_to_ptr.vmem [resolvable:$true] %s209_s12 }
  0x28   :  { %v54_v6 = vld [vmem:[#allocation5 + $0x38] sm:$0xff]  ;;  %v224_v7 = vpack.c.bf16 %v49_v4, %v47_v2  ;;  %v51_v9 = vld [vmem:[#allocation5 + $0x20] sm:$0xff]  ;;  %v53_v10 = vld [vmem:[#allocation5 + $0x30] sm:$0xff]  ;;  %s367_s13 = scalar_lea.vmem %s210_s12, 512  ;;  %p372_p3 = scmp.lt.s32.totalorder %s210_s12, %s210_s12 }
  0x29   :  { %v226_v8 = vpack.c.bf16 %v54_v6, %v52_v5  ;;  %223 = vmatprep.subr.bf16.mxu0 %v222_v3  ;;  %286 = vmatprep.subr.bf16.mxu1 %v222_v3  ;;  %v56_v11 = vld [vmem:[#allocation5 + $0x48] sm:$0xff]  ;;  %v58_v12 = vld [vmem:[#allocation5 + $0x58] sm:$0xff]  ;;  %v228_v13 = vpack.c.bf16 %v53_v10, %v51_v9  ;;  %v55_v15 = vld [vmem:[#allocation5 + $0x40] sm:$0xff]  ;;  %p368_p2 = scmp.ne.s32.totalorder %s210_s12, %s367_s13  ;;  %p373_p4 = scmp.lt.s32.totalorder %s367_s13, %s367_s13 }
  0x2a   :  { %225 = vmatpush1.bf16.xpose.msra.mxu0 %v224_v7  ;;  %302 = vmatpush1.bf16.xpose.msra.mxu1 %v224_v7  ;;  %v230_v14 = vpack.c.bf16 %v58_v12, %v56_v11  ;;  %v57_v16 = vld [vmem:[#allocation5 + $0x50] sm:$0xff]  ;;  %v60_v17 = vld [vmem:[#allocation5 + $0x68] sm:$0xff]  ;;  %v62_v18 = vld [vmem:[#allocation5 + $0x78] sm:$0xff] }
  0x2b   :  { %227 = vmatprep.subr.bf16.mxu0 %v226_v8  ;;  %287 = vmatprep.subr.bf16.mxu1 %v226_v8  ;;  %v232_v19 = vpack.c.bf16 %v57_v16, %v55_v15  ;;  %v234_v20 = vpack.c.bf16 %v62_v18, %v60_v17  ;;  %v59_v21 = vld [vmem:[#allocation5 + $0x60] sm:$0xff]  ;;  %v61_v22 = vld [vmem:[#allocation5 + $0x70] sm:$0xff]  ;;  %v44_v23 = vld [vmem:[#allocation2 + $0x8] sm:$0xff]  ;;  %p374_p5 = por %p373_p4, %p372_p3 }
  0x2c   :  { %v46_v24 = vld [vmem:[#allocation2 + $0x18] sm:$0xff]  ;;  %v64_v25 = vld [vmem:[#allocation5 + $0x88] sm:$0xff]  ;;  %187 = vmatprep.mubr.f32.mxu0 %v44_v23  ;;  %v236_v27 = vpack.c.bf16 %v61_v22, %v59_v21  ;;  %v63_v29 = vld [vmem:[#allocation5 + $0x80] sm:$0xff] }
  0x2d   :  { %v66_v26 = vld [vmem:[#allocation5 + $0x98] sm:$0xff]  ;;  %193 = vmatprep.mubr.f32.mxu1 %v46_v24  ;;  %v65_v30 = vld [vmem:[#allocation5 + $0x90] sm:$0xff]  ;;  %v68_v31 = vld [vmem:[#allocation5 + $0xa8] sm:$0xff]  ;;  %p375_p6 = pnand %p374_p5, %p368_p2 }
  0x2e   :  { %v238_v28 = vpack.c.bf16 %v66_v26, %v64_v25  ;;  %v70_v32 = vld [vmem:[#allocation5 + $0xb8] sm:$0xff]  ;;  %v240_v33 = vpack.c.bf16 %v65_v30, %v63_v29  ;;  %v67_v35 = vld [vmem:[#allocation5 + $0xa0] sm:$0xff]  ;;  %v69_v36 = vld [vmem:[#allocation5 + $0xb0] sm:$0xff] }
  0x2f   :  { %v242_v34 = vpack.c.bf16 %v70_v32, %v68_v31  ;;  %v72_v37 = vld [vmem:[#allocation5 + $0xc8] sm:$0xff]  ;;  %v74_v38 = vld [vmem:[#allocation5 + $0xd8] sm:$0xff]  ;;  %v244_v39 = vpack.c.bf16 %v69_v36, %v67_v35  ;;  %v71_v41 = vld [vmem:[#allocation5 + $0xc0] sm:$0xff]  ;;  %v113_v36 = vlaneseq }
  0x30   :  { %v246_v40 = vpack.c.bf16 %v74_v38, %v72_v37  ;;  %v73_v42 = vld [vmem:[#allocation5 + $0xd0] sm:$0xff]  ;;  %v76_v43 = vld [vmem:[#allocation5 + $0xe8] sm:$0xff]  ;;  %v78_v44 = vld [vmem:[#allocation5 + $0xf8] sm:$0xff] }
  0x31   :  { %v248_v45 = vpack.c.bf16 %v73_v42, %v71_v41  ;;  %v250_v46 = vpack.c.bf16 %v78_v44, %v76_v43  ;;  %v75_v47 = vld [vmem:[#allocation5 + $0xe0] sm:$0xff]  ;;  %v77_v48 = vld [vmem:[#allocation5 + $0xf0] sm:$0xff]  ;;  %v80_v49 = vld [vmem:[#allocation5 + $0x108] sm:$0xff]  ;;  %v114_v37 = vshrl.u32 %v113_v36, 7 }
  0x32   :  { %229 = vmatpush1.bf16.xpose.msra.mxu0 %v228_v13  ;;  %303 = vmatpush1.bf16.xpose.msra.mxu1 %v228_v13  ;;  %v82_v50 = vld [vmem:[#allocation5 + $0x118] sm:$0xff]  ;;  %v252_v51 = vpack.c.bf16 %v77_v48, %v75_v47  ;;  %v79_v53 = vld [vmem:[#allocation5 + $0x100] sm:$0xff]  ;;  %v81_v54 = vld [vmem:[#allocation5 + $0x110] sm:$0xff] }
  0x33   :  { %231 = vmatprep.subr.bf16.mxu0 %v230_v14  ;;  %288 = vmatprep.subr.bf16.mxu1 %v230_v14  ;;  %v254_v52 = vpack.c.bf16 %v82_v50, %v80_v49  ;;  %v84_v55 = vld [vmem:[#allocation5 + $0x128] sm:$0xff]  ;;  %v86_v56 = vld [vmem:[#allocation5 + $0x138] sm:$0xff]  ;;  %v256_v57 = vpack.c.bf16 %v81_v54, %v79_v53  ;;  %v83_v59 = vld [vmem:[#allocation5 + $0x120] sm:$0xff]  ;;  %v115_v38 = vsub.s32 0, %v114_v37 }
  0x34   :  { %v258_v58 = vpack.c.bf16 %v86_v56, %v84_v55  ;;  %v85_v60 = vld [vmem:[#allocation5 + $0x130] sm:$0xff]  ;;  %v88_v61 = vld [vmem:[#allocation5 + $0x148] sm:$0xff]  ;;  %v90_v62 = vld [vmem:[#allocation5 + $0x158] sm:$0xff] }
  0x35   :  { %v260_v63 = vpack.c.bf16 %v85_v60, %v83_v59  ;;  %v262_v0 = vpack.c.bf16 %v90_v62, %v88_v61  ;;  %v87_v1 = vld [vmem:[#allocation5 + $0x140] sm:$0xff]  ;;  %v89_v2 = vld [vmem:[#allocation5 + $0x150] sm:$0xff]  ;;  %v92_v3 = vld [vmem:[#allocation5 + $0x168] sm:$0xff] }
  0x36   :  { %v94_v4 = vld [vmem:[#allocation5 + $0x178] sm:$0xff]  ;;  %v264_v5 = vpack.c.bf16 %v89_v2, %v87_v1  ;;  %v91_v7 = vld [vmem:[#allocation5 + $0x160] sm:$0xff]  ;;  %v93_v8 = vld [vmem:[#allocation5 + $0x170] sm:$0xff] }
  0x37   :  { %v266_v6 = vpack.c.bf16 %v94_v4, %v92_v3  ;;  %v96_v9 = vld [vmem:[#allocation5 + $0x188] sm:$0xff]  ;;  %v98_v10 = vld [vmem:[#allocation5 + $0x198] sm:$0xff]  ;;  %v268_v11 = vpack.c.bf16 %v93_v8, %v91_v7  ;;  %v95_v13 = vld [vmem:[#allocation5 + $0x180] sm:$0xff] }
  0x38   :  { %v270_v12 = vpack.c.bf16 %v98_v10, %v96_v9  ;;  %v97_v14 = vld [vmem:[#allocation5 + $0x190] sm:$0xff]  ;;  %v100_v15 = vld [vmem:[#allocation5 + $0x1a8] sm:$0xff]  ;;  %v102_v16 = vld [vmem:[#allocation5 + $0x1b8] sm:$0xff] }
  0x39   :  { %v272_v17 = vpack.c.bf16 %v97_v14, %v95_v13  ;;  %v274_v18 = vpack.c.bf16 %v102_v16, %v100_v15  ;;  %v104_v21 = vld [vmem:[#allocation5 + $0x1c8] sm:$0xff]  ;;  %v106_v22 = vld [vmem:[#allocation5 + $0x1d8] sm:$0xff]  ;;  %v103_v25 = vld [vmem:[#allocation5 + $0x1c0] sm:$0xff] }
  0x3a   :  { %233 = vmatpush1.bf16.xpose.msra.mxu0 %v232_v19  ;;  %304 = vmatpush1.bf16.xpose.msra.mxu1 %v232_v19  ;;  %v99_v19 = vld [vmem:[#allocation5 + $0x1a0] sm:$0xff]  ;;  %v278_v24 = vpack.c.bf16 %v106_v22, %v104_v21  ;;  %v105_v26 = vld [vmem:[#allocation5 + $0x1d0] sm:$0xff] }
  0x3b   :  { %235 = vmatprep.subr.bf16.mxu0 %v234_v20  ;;  %289 = vmatprep.subr.bf16.mxu1 %v234_v20  ;;  %v101_v20 = vld [vmem:[#allocation5 + $0x1b0] sm:$0xff]  ;;  %v280_v29 = vpack.c.bf16 %v105_v26, %v103_v25  ;;  %v107_v31 = vld [vmem:[#allocation5 + $0x1e0] sm:$0xff] }
  0x3c   :  { %v276_v23 = vpack.c.bf16 %v101_v20, %v99_v19  ;;  %v109_v32 = vld [vmem:[#allocation5 + $0x1f0] sm:$0xff] }
  0x3d   :  { %v45_v35 = vld [vmem:[#allocation2 + $0x10] sm:$0xff] }
  0x42   :  { %237 = vmatpush1.bf16.xpose.msra.mxu0 %v236_v27  ;;  %305 = vmatpush1.bf16.xpose.msra.mxu1 %v236_v27  ;;  %v108_v27 = vld [vmem:[#allocation5 + $0x1e8] sm:$0xff] }
  0x43   :  { %239 = vmatprep.subr.bf16.mxu0 %v238_v28  ;;  %290 = vmatprep.subr.bf16.mxu1 %v238_v28  ;;  %v110_v28 = vld [vmem:[#allocation5 + $0x1f8] sm:$0xff] }
  0x44   :  { %v282_v30 = vpack.c.bf16 %v110_v28, %v108_v27 }
  0x4a   :  { %241 = vmatpush1.bf16.xpose.msra.mxu0 %v240_v33  ;;  %306 = vmatpush1.bf16.xpose.msra.mxu1 %v240_v33  ;;  %v284_v33 = vpack.c.bf16 %v109_v32, %v107_v31 }
  0x4b   :  { %243 = vmatprep.subr.bf16.mxu0 %v242_v34  ;;  %291 = vmatprep.subr.bf16.mxu1 %v242_v34  ;;  %v43_v34 = vld [vmem:[#allocation2] sm:$0xff] }
  0x52   :  { %245 = vmatpush1.bf16.xpose.msra.mxu0 %v244_v39  ;;  %307 = vmatpush1.bf16.xpose.msra.mxu1 %v244_v39  ;;  %v111_v39 = vld [vmem:[%s470_s2] sm:$0x3] }
  0x53   :  { %247 = vmatprep.subr.bf16.mxu0 %v246_v40  ;;  %292 = vmatprep.subr.bf16.mxu1 %v246_v40  ;;  %v119_v40 = vsub.s32 1, %v114_v37  ;;  %v116_v41 = vrot.slane %v111_v39, %v115_v38 }
  0x55   :  { %v120_v42 = vrot.slane %v111_v39, %v119_v40 }
  0x5a   :  { %249 = vmatpush1.bf16.xpose.msra.mxu0 %v248_v45  ;;  %308 = vmatpush1.bf16.xpose.msra.mxu1 %v248_v45 }
  0x5b   :  { %251 = vmatprep.subr.bf16.mxu0 %v250_v46  ;;  %293 = vmatprep.subr.bf16.mxu1 %v250_v46 }
  0x62   :  { %253 = vmatpush1.bf16.xpose.msra.mxu0 %v252_v51  ;;  %309 = vmatpush1.bf16.xpose.msra.mxu1 %v252_v51 }
  0x63   :  { %255 = vmatprep.subr.bf16.mxu0 %v254_v52  ;;  %294 = vmatprep.subr.bf16.mxu1 %v254_v52 }
  0x6a   :  { %257 = vmatpush1.bf16.xpose.msra.mxu0 %v256_v57  ;;  %310 = vmatpush1.bf16.xpose.msra.mxu1 %v256_v57 }
  0x6b   :  { %259 = vmatprep.subr.bf16.mxu0 %v258_v58  ;;  %295 = vmatprep.subr.bf16.mxu1 %v258_v58 }
  0x72   :  { %261 = vmatpush1.bf16.xpose.msra.mxu0 %v260_v63  ;;  %311 = vmatpush1.bf16.xpose.msra.mxu1 %v260_v63 }
  0x73   :  { %263 = vmatprep.subr.bf16.mxu0 %v262_v0  ;;  %296 = vmatprep.subr.bf16.mxu1 %v262_v0 }
  0x7a   :  { %265 = vmatpush1.bf16.xpose.msra.mxu0 %v264_v5  ;;  %312 = vmatpush1.bf16.xpose.msra.mxu1 %v264_v5 }
  0x7b   :  { %267 = vmatprep.subr.bf16.mxu0 %v266_v6  ;;  %297 = vmatprep.subr.bf16.mxu1 %v266_v6 }
  0x82   :  { %269 = vmatpush1.bf16.xpose.msra.mxu0 %v268_v11  ;;  %313 = vmatpush1.bf16.xpose.msra.mxu1 %v268_v11 }
  0x83   :  { %271 = vmatprep.subr.bf16.mxu0 %v270_v12  ;;  %298 = vmatprep.subr.bf16.mxu1 %v270_v12 }
  0x8a   :  { %273 = vmatpush1.bf16.xpose.msra.mxu0 %v272_v17  ;;  %314 = vmatpush1.bf16.xpose.msra.mxu1 %v272_v17 }
  0x8b   :  { %275 = vmatprep.subr.bf16.mxu0 %v274_v18  ;;  %299 = vmatprep.subr.bf16.mxu1 %v274_v18 }
  0x92   :  { %277 = vmatpush1.bf16.xpose.msra.mxu0 %v276_v23  ;;  %315 = vmatpush1.bf16.xpose.msra.mxu1 %v276_v23 }
  0x93   :  { %279 = vmatprep.subr.bf16.mxu0 %v278_v24  ;;  %300 = vmatprep.subr.bf16.mxu1 %v278_v24 }
  0x9a   :  { %281 = vmatpush1.bf16.xpose.msra.mxu0 %v280_v29  ;;  %316 = vmatpush1.bf16.xpose.msra.mxu1 %v280_v29 }
  0x9b   :  { %283 = vmatprep.subr.bf16.mxu0 %v282_v30  ;;  %301 = vmatprep.subr.bf16.mxu1 %v282_v30 }
  0xa2   :  { %285 = vmatpush1.bf16.xpose.msra.mxu0 %v284_v33  ;;  %317 = vmatpush1.bf16.xpose.msra.mxu1 %v284_v33 }
  0xa9   :  { %188 = vmatmul.mubr.f32.vlgmr.msra.gmra.mrb[0].mxu0 %v43_v34  ;;  %194 = vmatmul.mubr.f32.vlgmr.msra.gmra.mrb[0].mxu1 %v45_v35 }
 0x17c   :  { %v189_v43 = vpop.f32.mrb[0].mxu0  ;;  %v195_v44 = vpop.f32.mrb[0].mxu1 }
 0x17d   :  { %v190_v45 = vadd.f32 %v189_v43, %v116_v41  ;;  %v196_v46 = vadd.f32 %v195_v44, %v116_v41  ;;  %v191_v47 = vpop.f32.mrb[1].mxu0  ;;  %v197_v48 = vpop.f32.mrb[1].mxu1 }
 0x17e   :  { %v192_v49 = vadd.f32 %v191_v47, %v120_v42  ;;  %v198_v50 = vadd.f32 %v197_v48, %v120_v42 }
 0x17f   :  { %200 = vst [vmem:[#allocation7] sm:$0xff] %v190_v45  ;;  %202 = vst [vmem:[#allocation7 + $0x10] sm:$0xff] %v196_v46 }
 0x180   :  { %201 = vst [vmem:[#allocation7 + $0x8] sm:$0xff] %v192_v49  ;;  %203 = vst [vmem:[#allocation7 + $0x18] sm:$0xff] %v198_v50 }
 0x181   :  { %378 = shalt.err (!%p375_p6)
}
 0x182   :  { %s379_s15 = scalar_lea.hbm %s471_s3, 512 }
 0x183   :  { %p380_p7 = scmp.ne.s32.totalorder %s471_s3, %s379_s15  ;;  %p383_p8 = scmp.lt.u32.totalorder %s379_s15, %s471_s3 }
 0x185   :  { %p385_p9 = pnand %p383_p8, %p380_p7 }
 0x187   :  { %388 = shalt.err (!%p385_p9)
}
 0x188   :  { %215 = dma.vmem_to_hbm [thread:$0]  %s210_s12, 512, %s471_s3, [#allocation4], %s396_s22, %s396_s22, %s397_s23  }
 0x189   :  { %393 = dma.done.wait [#allocation4], 512  }
 0x18a   :  { %394 = vsyncadd [#allocation4], 4294966784 }
 0x18b   :  { %219 = vsyncpa [#allocation3], 1 }
 0x18c   :  { %220 = vsyncpa [#allocation6], 1 }
 0x18d   :  { %221 = vsyncpa [#allocation4], 1 }

</bundles_post_ra>
